<compile_context>
chip_gen: v6e
topology: v6e:2x2x1
jax: 0.10.0
libtpu: 0.0.40
codegen_flags: <defaults>
</compile_context>

<pallas_src>
import functools
import math

import jax
import jax.numpy as jnp
from jax.experimental import pallas as pl
from jax.experimental.pallas import tpu as pltpu


_MIN_LANES = 128
_MIN_PALLAS_BYTES = 256 << 10  # below this, plain XLA fusion beats pallas_call overhead


def _round_up(x, m):
    return ((x + m - 1) // m) * m


def _choose_lanes(total):
    for lanes in (512, 256, 128):
        if total % lanes == 0:
            return lanes
    return 0  # ragged: no multiple-of-128 lane width divides total


def _vmem_capacity_bytes():
    try:
        return int(pltpu.get_tpu_info().vmem_capacity_bytes)
    except Exception:
        return 64 << 20  # conservative default = v7x per-TensorCore VMEM


def _add_kernel(w_ref, x0_ref, x1_ref, o_ref, *, eps):
    # w_ref  : SMEM (2,) f32 fusion weights
    # x0_ref : VMEM (tm, lanes) tile of x[0]
    # x1_ref : VMEM (tm, lanes) tile of x[1]
    # o_ref  : VMEM (tm, lanes) output tile
    w0 = jnp.maximum(w_ref[0], 0.0)          # ReLU
    w1 = jnp.maximum(w_ref[1], 0.0)
    s = w0 + w1 + eps                        # sum(relu(w)) + eps
    o_ref[...] = (w0 / s) * x0_ref[...] + (w1 / s) * x1_ref[...]


def add_fusion_ref(x, w, eps=1e-12):
    wr = jnp.maximum(w, 0.0)
    weight = wr / (jnp.sum(wr, axis=0) + eps)
    return weight[0] * x[0] + weight[1] * x[1]


def add_fusion(x, w, eps=1e-12, *, force_pallas=False):
    """Pallas forward of the `Add` module.

    x: float32 array of shape (2, *dims); x[0] and x[1] are fused.
    w: float32 array of shape (2,)
    returns: float32 array of shape dims
    """
    assert x.shape[0] == 2 and w.shape == (2,)
    out_dims = x.shape[1:]
    total = math.prod(out_dims)
    lanes = _choose_lanes(total)
    out_bytes = total * x.dtype.itemsize

    # Small tensors: fixed pallas_call/grid overhead dominates -> plain jnp.
    # Ragged totals (not a multiple of 128) would need a padded copy -> also jnp.
    # TODO(synk): a ragged tail could be handled by a kernel on the aligned
    # prefix + tiny jnp tail, but that reintroduces a slice copy of the inputs.
    if lanes == 0 or (out_bytes < _MIN_PALLAS_BYTES and not force_pallas):
        return add_fusion_ref(x, w, eps)

    rows = total // lanes
    xf = x.reshape(2, rows, lanes)  # pure reshape: no pad, no copy

    # --- Generation-aware tile sizing (HBM-bandwidth-bound streaming kernel). ---
    vmem_cap = _vmem_capacity_bytes()
    target_tile_bytes = (8 << 20) if vmem_cap >= (96 << 20) else (4 << 20)
    rows_per_tile = max(8, (target_tile_bytes // (lanes * x.dtype.itemsize)) // 8 * 8)

    if rows <= 64:
        tm = rows  # single block; block dim == full array dim is always legal
    elif rows <= 2 * rows_per_tile:
        # Force >= 2 grid blocks so ("parallel",) can split across v7x's 2 TCs.
        tm = min(_round_up(pl.cdiv(rows, 2), 8), rows_per_tile)
    else:
        tm = rows_per_tile
    grid_rows = pl.cdiv(rows, tm)

    # vmem limit: double-buffered (2 inputs + 1 output) tiles + margin,
    # clamped against the physical per-generation VMEM capacity.
    tile_bytes = tm * lanes * x.dtype.itemsize
    vmem_limit = 2 * 3 * tile_bytes + (8 << 20)
    vmem_limit = max(vmem_limit, 16 << 20)
    vmem_limit = min(vmem_limit, vmem_cap - (4 << 20))

    kernel = functools.partial(_add_kernel, eps=float(eps))

    out2d = pl.pallas_call(
        kernel,
        out_shape=jax.ShapeDtypeStruct((rows, lanes), x.dtype),
        grid=(grid_rows,),
        in_specs=[
            # fusion weights: whole (2,) vector in SMEM, scalar reads in-kernel
            pl.BlockSpec(memory_space=pltpu.MemorySpace.SMEM),
            # x[0] tile: same HBM buffer, leading index 0, squeezed away
            pl.BlockSpec((pl.Squeezed(), tm, lanes), lambda i: (0, i, 0)),
            # x[1] tile: same HBM buffer, leading index 1
            pl.BlockSpec((pl.Squeezed(), tm, lanes), lambda i: (1, i, 0)),
        ],
        out_specs=pl.BlockSpec((tm, lanes), lambda i: (i, 0)),
        compiler_params=pltpu.CompilerParams(
            dimension_semantics=("parallel",),
            vmem_limit_bytes=int(vmem_limit),
        ),
    )(w, xf, xf)

    return out2d.reshape(out_dims)


if __name__ == "__main__":
    key = jax.random.PRNGKey(0)
    k0, k1, k2 = jax.random.split(key, 3)

    # Matches nn.Parameter(torch.ones(2)), deterministically perturbed so the
    # normalization is non-trivial.
    w = jnp.ones((2,), dtype=jnp.float32)
    w = w + 0.1 * jax.random.normal(k1, (2,), dtype=jnp.float32)

    # Module-sized input (2, 4, 16, 16); forced through the Pallas path.
    C, H, W = 4, 16, 16
    x = jax.random.normal(k0, (2, C, H, W), dtype=jnp.float32)
    out = jax.block_until_ready(add_fusion(x, w, force_pallas=True))
    ref = add_fusion_ref(x, w)
    assert out.shape == (C, H, W)
    assert jnp.allclose(out, ref, atol=1e-6, rtol=1e-6), "mismatch vs reference (small)"

    # Larger input: exercises the multi-block grid (>= 2 blocks -> megacore split).
    x2 = jax.random.normal(k2, (2, 32, 64, 128), dtype=jnp.float32)
    out2 = jax.block_until_ready(add_fusion(x2, w))
    ref2 = add_fusion_ref(x2, w)
    assert jnp.allclose(out2, ref2, atol=1e-6, rtol=1e-6), "mismatch vs reference (large)"

    # Ragged / tiny shape: exercises the documented jnp fallback path.
    x3 = jax.random.normal(k0, (2, 3, 5, 7), dtype=jnp.float32)
    out3 = jax.block_until_ready(add_fusion(x3, w))
    assert jnp.allclose(out3, add_fusion_ref(x3, w), atol=1e-6, rtol=1e-6)

    print("KERNEL_OK")
</pallas_src>

<mosaic_0001>
module attributes {stable_mosaic.version = 11 : i64} {
  func.func @_add_kernel(%arg0: i32, %arg1: memref<2xf32, #tpu.memory_space<smem>>, %arg2: memref<1x2x512xf32, #tpu.memory_space<vmem>>, %arg3: memref<1x2x512xf32, #tpu.memory_space<vmem>>, %arg4: memref<2x512xf32, #tpu.memory_space<vmem>>) attributes {dimension_semantics = [#tpu.dimension_semantics<parallel>], iteration_bounds = array<i64: 1>, scalar_prefetch = 0 : i64, scratch_operands = 0 : i64, tpu.core_type = #tpu.core_type<tc>, window_params = [{transform_indices = @transform_0, window_bounds = array<i64: 2>}, {transform_indices = @transform_1, window_bounds = array<i64: 1, 2, 512>}, {transform_indices = @transform_2, window_bounds = array<i64: 1, 2, 512>}, {transform_indices = @transform_3, window_bounds = array<i64: 2, 512>}]} {
    %c0 = arith.constant 0 : index
    %0 = memref.load %arg1[%c0] : memref<2xf32, #tpu.memory_space<smem>>
    %cst = arith.constant 0.000000e+00 : f32
    %1 = arith.maximumf %0, %cst : f32
    %c1 = arith.constant 1 : index
    %2 = memref.load %arg1[%c1] : memref<2xf32, #tpu.memory_space<smem>>
    %cst_0 = arith.constant 0.000000e+00 : f32
    %3 = arith.maximumf %2, %cst_0 : f32
    %4 = arith.addf %1, %3 : f32
    %cst_1 = arith.constant 9.99999996E-13 : f32
    %5 = arith.addf %4, %cst_1 : f32
    %6 = arith.divf %1, %5 : f32
    %c0_2 = arith.constant 0 : index
    %c0_3 = arith.constant 0 : index
    %c0_4 = arith.constant 0 : index
    %7 = vector.load %arg2[%c0_2, %c0_3, %c0_4] : memref<1x2x512xf32, #tpu.memory_space<vmem>>, vector<1x2x512xf32>
    %8 = vector.shape_cast %7 : vector<1x2x512xf32> to vector<2x512xf32>
    %9 = vector.broadcast %6 : f32 to vector<2x512xf32>
    %10 = arith.mulf %9, %8 : vector<2x512xf32>
    %11 = arith.divf %3, %5 : f32
    %c0_5 = arith.constant 0 : index
    %c0_6 = arith.constant 0 : index
    %c0_7 = arith.constant 0 : index
    %12 = vector.load %arg3[%c0_5, %c0_6, %c0_7] : memref<1x2x512xf32, #tpu.memory_space<vmem>>, vector<1x2x512xf32>
    %13 = vector.shape_cast %12 : vector<1x2x512xf32> to vector<2x512xf32>
    %14 = vector.broadcast %11 : f32 to vector<2x512xf32>
    %15 = arith.mulf %14, %13 : vector<2x512xf32>
    %16 = arith.addf %10, %15 : vector<2x512xf32>
    %c0_8 = arith.constant 0 : index
    %c0_9 = arith.constant 0 : index
    %17 = vector.load %arg4[%c0_8, %c0_9] : memref<2x512xf32, #tpu.memory_space<vmem>>, vector<2x512xf32>
    tpu.vector_store %arg4[%c0_8, %c0_9], %16 {strides = array<i32>} : memref<2x512xf32, #tpu.memory_space<vmem>>, vector<2x512xf32>,
    return
  }
  func.func @transform_0(%arg0: i32) -> i32 {
    %c0_i32 = arith.constant 0 : i32
    %c0_i32_0 = arith.constant 0 : i32
    return %c0_i32 : i32
  }
  func.func @transform_1(%arg0: i32) -> (i32, i32, i32) {
    %c0_i32 = arith.constant 0 : i32
    %c0_i32_0 = arith.constant 0 : i32
    %c0_i32_1 = arith.constant 0 : i32
    return %c0_i32, %arg0, %c0_i32_0 : i32, i32, i32
  }
  func.func @transform_2(%arg0: i32) -> (i32, i32, i32) {
    %c1_i32 = arith.constant 1 : i32
    %c0_i32 = arith.constant 0 : i32
    %c0_i32_0 = arith.constant 0 : i32
    return %c1_i32, %arg0, %c0_i32 : i32, i32, i32
  }
  func.func @transform_3(%arg0: i32) -> (i32, i32) {
    %c0_i32 = arith.constant 0 : i32
    %c0_i32_0 = arith.constant 0 : i32
    return %arg0, %c0_i32 : i32, i32
  }
}

</mosaic_0001>

<bundles_post_ra>
// kernel: tpu_custom_call.1
= control target key start
LH: loop header
LB: loop body
LE: loop exit
PB: predicated region body
PF: predicated region fallthrough
CT: control target
= control target key end

     0   :  { %8 = vsyncpa [#allocation5], 0  ;;  %s216_s0 = inlined_call_operand.hbm [shape: f32[2], index: 0, kind: input, shape index: {}]   ;;  %s217_s1 = inlined_call_operand.hbm [shape: f32[2,2,512], index: 1, kind: input, shape index: {}]   ;;  %s218_s2 = inlined_call_operand.hbm [shape: f32[2,2,512], index: 2, kind: input, shape index: {}]   ;;  %s219_s3 = inlined_call_operand.hbm [shape: f32[2,512], index: 3, kind: output, shape index: {}]  }
   0x1   :  { %9 = vsyncpa [#allocation3], 0 }
   0x2   :  { %10 = vsyncpa [#allocation8], 0 }
   0x3   :  { %11 = vsyncpa [#allocation4], 0  ;;  %s179_s12 = smov [#allocation2]   ;;  %s180_s15 = smov [#allocation6]  }
   0x4   :  { %19 = dma.hbm_to_smem %s216_s0, 16, %s179_s12, [#allocation5]  }
   0x5   :  { %s26_s16 = sshll.u32 %s180_s15, 4  ;;  %s35_s19 = scalar_lea.hbm %s218_s2, 128  ;;  %s27_s16 = int_to_ptr.vmem [resolvable:$true] %s26_s16 }
   0x6   :  { %s116_s20 = scalar_lea.vmem %s27_s16, 128  ;;  %p121_p1 = scmp.lt.s32.totalorder %s27_s16, %s27_s16 }
   0x7   :  { %p117_p0 = scmp.ne.s32.totalorder %s27_s16, %s116_s20  ;;  %p122_p2 = scmp.lt.s32.totalorder %s116_s20, %s116_s20 }
   0x9   :  { %p123_p3 = por %p122_p2, %p121_p1 }
   0xb   :  { %p124_p4 = pnand %p123_p3, %p117_p0 }
   0xd   :  { %127 = shalt.err (!%p124_p4)
}
   0xe   :  { %29 = dma.hbm_to_vmem [thread:$0]  %s217_s1, 128, %s27_s16, [#allocation3]  }
   0xf   :  { %s181_s23 = smov [#allocation7]  }
  0x10   :  { %s37_s0 = sshll.u32 %s181_s23, 4  ;;  %s38_s0 = int_to_ptr.vmem [resolvable:$true] %s37_s0 }
  0x11   :  { %s138_s24 = scalar_lea.vmem %s38_s0, 128  ;;  %p143_p6 = scmp.lt.s32.totalorder %s38_s0, %s38_s0 }
  0x12   :  { %p139_p5 = scmp.ne.s32.totalorder %s38_s0, %s138_s24  ;;  %p144_p7 = scmp.lt.s32.totalorder %s138_s24, %s138_s24 }
  0x14   :  { %p145_p8 = por %p144_p7, %p143_p6 }
  0x16   :  { %p146_p9 = pnand %p145_p8, %p139_p5 }
  0x18   :  { %149 = shalt.err (!%p146_p9)
}
  0x19   :  { %40 = dma.hbm_to_vmem [thread:$0]  %s35_s19, 128, %s38_s0, [#allocation8]  }
  0x1a   :  { %171 = dma.done.wait [#allocation5], 16  }
  0x1b   :  { %172 = vsyncadd [#allocation5], 4294967280 }
  0x1c   :  { %173 = dma.done.wait [#allocation3], 128  }
  0x1d   :  { %174 = vsyncadd [#allocation3], 4294967168 }
  0x1e   :  { %175 = dma.done.wait [#allocation8], 128  }
  0x1f   :  { %176 = vsyncadd [#allocation8], 4294967168 }
  0x20   :  { %50 = sfence }
  0x21   :  { %s51_s2 = sld [smem:[#allocation2]]  ;;  %s182_s25 = smov 0.0   ;;  %v61_v2 = vld [vmem:[#allocation6] sm:$0xff]  ;;  %v68_v3 = vld [vmem:[#allocation7] sm:$0xff] }
  0x22   :  { %s90_s1 = sld [smem:[#allocation2 + $0x1]]  ;;  %s183_s6 = smov [#allocation9]  }
  0x23   :  { %s79_s7 = sshll.u32 %s183_s6, 4  ;;  %s80_s7 = int_to_ptr.vmem [resolvable:$true] %s79_s7 }
  0x24   :  { %s151_s8 = scalar_lea.vmem %s80_s7, 128  ;;  %p156_p11 = scmp.lt.s32.totalorder %s80_s7, %s80_s7 }
  0x25   :  { %p152_p10 = scmp.ne.s32.totalorder %s80_s7, %s151_s8  ;;  %p157_p12 = scmp.lt.s32.totalorder %s151_s8, %s151_s8 }
  0x27   :  { %s52_s26 = smax.f32 %s182_s25, %s51_s2  ;;  %p158_p13 = por %p157_p12, %p156_p11 }
  0x28   :  { %s54_s27 = smax.f32 %s182_s25, %s90_s1 }
  0x29   :  { %s55_s28 = sadd.f32 %s54_s27, %s52_s26  ;;  %p159_p0 = pnand %p158_p13, %p152_p10 }
  0x2b   :  { %s56_s29 = sadd.f32 1e-12, %s55_s28 }
  0x2d   :  { %v57_v0 = vstv %s56_s29 }
  0x2e   :  { %98 = vrcp.f32 %v57_v0 }
  0x3b   :  { %v99_v1 = vpop.eup %98 }
  0x3c   :  { %91 = vpush %v99_v1 }
  0x6d   :  { %s92_s30 = spop %91 }
  0x6e   :  { %s60_s4 = smul.f32 %s92_s30, %s52_s26 }
  0x6f   :  { %s67_s5 = smul.f32 %s92_s30, %s54_s27 }
  0x70   :  { %v62_v4 = vstv %s60_s4 }
  0x71   :  { %v63_v5 = vmul.f32 %v62_v4, %v61_v2  ;;  %v69_v6 = vstv %s67_s5 }
  0x72   :  { %v70_v7 = vmul.f32 %v69_v6, %v68_v3 }
  0x74   :  { %v71_v8 = vadd.f32 %v70_v7, %v63_v5 }
  0x76   :  { %72 = vst [vmem:[#allocation9] sm:$0xff] %v71_v8 }
  0x77   :  { %162 = shalt.err (!%p159_p0)
}
  0x78   :  { %82 = dma.vmem_to_hbm [thread:$0]  %s80_s7, 128, %s219_s3, [#allocation4]  }
  0x79   :  { %177 = dma.done.wait [#allocation4], 128  }
  0x7a   :  { %178 = vsyncadd [#allocation4], 4294967168 }
  0x7b   :  { %86 = vsyncpa [#allocation3], 1 }
  0x7c   :  { %87 = vsyncpa [#allocation8], 1 }
  0x7d   :  { %88 = vsyncpa [#allocation4], 1 }
  0x7e   :  { %89 = vsyncpa [#allocation5], 1 }

</bundles_post_ra>
